<compile_context>
chip_gen: v7x
topology: tpu7x:2x2x1
jax: 0.10.0
libtpu: 0.0.40
codegen_flags: <defaults>
</compile_context>

<pallas_src>
import functools

import jax
import jax.numpy as jnp
from jax.experimental import pallas as pl
from jax.experimental.pallas import tpu as pltpu


# ---------------------------------------------------------------------------
# Pass 1: dilated Conv1d + bias + ReLU + partial BatchNorm statistics.
# ---------------------------------------------------------------------------
def _conv_relu_stats_kernel(x_ref, w_ref, b_ref, y_ref, stats_ref, *,
                            K, dilation, T_tile, T_valid):
    # x_ref:     (1, 1, C_in, T_tile + halo)  framed input tile (halo included)
    # w_ref:     (C_out, K*C_in)              fused conv weight (tap-major cols)
    # b_ref:     (C_out, 1)                   conv bias
    # y_ref:     (1, C_out, T_tile)           conv+ReLU output tile
    # stats_ref: (1, 1, C_out, 2)             per-tile [sum, sumsq] per channel
    xb = x_ref[0, 0]                                        # (C_in, T_tile+halo)
    if K > 1:
        xs = jnp.concatenate(
            [xb[:, k * dilation:k * dilation + T_tile] for k in range(K)],
            axis=0)                                         # (K*C_in, T_tile)
    else:
        xs = xb[:, :T_tile]
    # One deep MXU contraction over K*C_in instead of K shallow ones.
    acc = jnp.dot(w_ref[...], xs, preferred_element_type=jnp.float32)
    y = jnp.maximum(acc + b_ref[...], 0.0)                  # bias + ReLU
    y_ref[0] = y.astype(y_ref.dtype)

    # Partial BN statistics; mask the zero-padded time tail of the last tile.
    t = pl.program_id(1)
    col = jax.lax.broadcasted_iota(jnp.int32, (1, T_tile), 1)
    valid = (t * T_tile + col) < T_valid
    ym = jnp.where(valid, y, 0.0)
    s1 = jnp.sum(ym, axis=1, keepdims=True)                 # (C_out, 1)
    s2 = jnp.sum(ym * ym, axis=1, keepdims=True)            # (C_out, 1)
    stats_ref[0, 0] = jnp.concatenate([s1, s2], axis=1)     # (C_out, 2)


# ---------------------------------------------------------------------------
# Pass 2: apply BatchNorm (y * scale[c] + shift[c]) as a streaming pass.
# ---------------------------------------------------------------------------
def _bn_apply_kernel(y_ref, scale_ref, shift_ref, o_ref):
    # y_ref / o_ref: (1, C_out, T_tile); scale/shift: (C_out, 1)
    o_ref[0] = y_ref[0] * scale_ref[...] + shift_ref[...]


def _pick_t_tile(C_in, C_out, K, dilation, budget_bytes=24 * 1024 * 1024):
    """Largest T_tile in {512, 256, 128} whose working set fits the budget
    (budget chosen so double-buffered tiles fit comfortably in v7x's 64 MiB)."""
    halo = dilation * (K - 1)
    t = 512
    while t > 128:
        in_tile = 4 * C_in * (t + halo)
        out_tile = 4 * C_out * t
        stacked = 4 * K * C_in * t
        need = 2 * (in_tile + out_tile) + stacked + 4 * C_out * K * C_in
        if need <= budget_bytes:
            break
        t //= 2
    return max(t, 128)


def tdnn_block_forward(x, weight, bias, gamma, beta, *, kernel_size, dilation,
                       eps=1e-5):
    """x: (B, C_in, T) f32.  weight: (C_out, C_in, K).  Returns (B, C_out, T)."""
    B, C_in, T = x.shape
    C_out, C_in_w, K = weight.shape
    assert K == kernel_size and C_in_w == C_in
    assert K % 2 == 1, "SpeechBrain Conv1d 'same' padding assumes odd kernel_size"

    pad = dilation * (K - 1) // 2          # 'same' padding for stride=1
    halo = dilation * (K - 1)              # == 2*pad for odd K

    T_tile = _pick_t_tile(C_in, C_out, K, dilation)
    nT = pl.cdiv(T, T_tile)
    T_pad = nT * T_tile

    # Reflect 'same' padding, then zero-extend so every tile has a full halo.
    # TODO(synk): the framed copy duplicates only the halo but still costs one
    # extra pass of x through HBM; an overlapping-window input BlockSpec would
    # remove it once element-indexed blocks are guaranteed on all generations.
    x_pad = jnp.pad(x, ((0, 0), (0, 0), (pad, pad)), mode="reflect")
    extra = (T_pad + halo) - (T + 2 * pad)
    if extra > 0:
        x_pad = jnp.pad(x_pad, ((0, 0), (0, 0), (0, extra)))
    frames = jnp.stack(
        [x_pad[:, :, t * T_tile:t * T_tile + T_tile + halo] for t in range(nT)],
        axis=1)                                             # (B, nT, C_in, T_tile+halo)

    # Fused weight: columns ordered [tap0 channels..., tap1 channels..., ...].
    w_fused = jnp.transpose(weight, (0, 2, 1)).reshape(C_out, K * C_in)
    w_fused = w_fused.astype(jnp.float32)
    bias2d = bias.reshape(C_out, 1).astype(jnp.float32)

    kern1 = functools.partial(_conv_relu_stats_kernel, K=K, dilation=dilation,
                              T_tile=T_tile, T_valid=T)

    flops1 = 2 * B * C_out * K * C_in * T_pad + 4 * B * C_out * T_pad
    bytes1 = 4 * (frames.size + w_fused.size + bias2d.size
                  + B * C_out * T_pad + B * nT * C_out * 2)

    y, stats = pl.pallas_call(
        kern1,
        grid=(B, nT),
        in_specs=[
            pl.BlockSpec((1, 1, C_in, T_tile + halo), lambda b, t: (b, t, 0, 0)),
            pl.BlockSpec((C_out, K * C_in), lambda b, t: (0, 0)),   # weight resident
            pl.BlockSpec((C_out, 1), lambda b, t: (0, 0)),          # bias resident
        ],
        out_specs=(
            pl.BlockSpec((1, C_out, T_tile), lambda b, t: (b, 0, t)),
            pl.BlockSpec((1, 1, C_out, 2), lambda b, t: (b, t, 0, 0)),
        ),
        out_shape=(
            jax.ShapeDtypeStruct((B, C_out, T_pad), jnp.float32),
            jax.ShapeDtypeStruct((B, nT, C_out, 2), jnp.float32),
        ),
        compiler_params=pltpu.CompilerParams(
            dimension_semantics=("parallel", "parallel"),
            vmem_limit_bytes=48 * 1024 * 1024),
        cost_estimate=pl.CostEstimate(flops=flops1, transcendentals=0,
                                      bytes_accessed=bytes1),
    )(frames, w_fused, bias2d)

    # Training-mode BN statistics (biased variance over (B, T)) from the tiny
    # per-tile accumulators; E[x^2]-mean^2 in f32 (values are ReLU outputs).
    totals = jnp.sum(stats, axis=(0, 1))                    # (C_out, 2)
    count = float(B * T)
    mean = totals[:, 0] / count
    var = jnp.maximum(totals[:, 1] / count - mean * mean, 0.0)
    inv_std = jax.lax.rsqrt(var + eps)
    scale = (gamma * inv_std).reshape(C_out, 1).astype(jnp.float32)
    shift = (beta - gamma * mean * inv_std).reshape(C_out, 1).astype(jnp.float32)

    flops2 = 2 * B * C_out * T_pad
    bytes2 = 4 * (2 * B * C_out * T_pad + 2 * C_out)

    y_norm = pl.pallas_call(
        _bn_apply_kernel,
        grid=(B, nT),
        in_specs=[
            pl.BlockSpec((1, C_out, T_tile), lambda b, t: (b, 0, t)),
            pl.BlockSpec((C_out, 1), lambda b, t: (0, 0)),
            pl.BlockSpec((C_out, 1), lambda b, t: (0, 0)),
        ],
        out_specs=pl.BlockSpec((1, C_out, T_tile), lambda b, t: (b, 0, t)),
        out_shape=jax.ShapeDtypeStruct((B, C_out, T_pad), jnp.float32),
        input_output_aliases={0: 0},          # normalize y in place
        compiler_params=pltpu.CompilerParams(
            dimension_semantics=("parallel", "parallel"),
            vmem_limit_bytes=32 * 1024 * 1024),
        cost_estimate=pl.CostEstimate(flops=flops2, transcendentals=0,
                                      bytes_accessed=bytes2),
    )(y, scale, shift)

    return y_norm[:, :, :T]


def tdnn_block_reference(x, weight, bias, gamma, beta, *, kernel_size, dilation,
                         eps=1e-5):
    """Pure-JAX reference of the same forward pass (for verification)."""
    K = kernel_size
    pad = dilation * (K - 1) // 2
    x_pad = jnp.pad(x, ((0, 0), (0, 0), (pad, pad)), mode="reflect")
    y = jax.lax.conv_general_dilated(
        x_pad, weight, window_strides=(1,), padding="VALID",
        rhs_dilation=(dilation,),
        dimension_numbers=("NCH", "OIH", "NCH"))
    y = y + bias[None, :, None]
    y = jnp.maximum(y, 0.0)
    mean = jnp.mean(y, axis=(0, 2), keepdims=True)
    var = jnp.mean((y - mean) ** 2, axis=(0, 2), keepdims=True)
    return (y - mean) / jnp.sqrt(var + eps) * gamma[None, :, None] \
        + beta[None, :, None]


if __name__ == "__main__":
    # Small shapes consistent with TDNNBlock(in_channels=4, out_channels=8,
    # kernel_size=3, dilation=2) on x of shape (batch, channels, time).
    B, C_in, C_out, T = 2, 4, 8, 16
    K, dilation = 3, 2

    key = jax.random.PRNGKey(0)
    kx, kw, kb = jax.random.split(key, 3)
    x = jax.random.normal(kx, (B, C_in, T), dtype=jnp.float32)
    weight = jax.random.normal(kw, (C_out, C_in, K), dtype=jnp.float32) * 0.1
    bias = jax.random.normal(kb, (C_out,), dtype=jnp.float32) * 0.1
    gamma = jnp.ones((C_out,), dtype=jnp.float32)   # BN affine init (weight=1)
    beta = jnp.zeros((C_out,), dtype=jnp.float32)   # BN affine init (bias=0)

    fwd = jax.jit(functools.partial(tdnn_block_forward,
                                    kernel_size=K, dilation=dilation))
    out = fwd(x, weight, bias, gamma, beta)
    out = jax.block_until_ready(out)

    ref = tdnn_block_reference(x, weight, bias, gamma, beta,
                               kernel_size=K, dilation=dilation)
    assert out.shape == (B, C_out, T)
    assert jnp.allclose(out, ref, atol=1e-4, rtol=1e-4), "mismatch vs reference"

    print("KERNEL_OK")
</pallas_src>

<mosaic_0001>
module attributes {stable_mosaic.version = 11 : i64} {
  func.func @_conv_relu_stats_kernel(%arg0: i32, %arg1: i32, %arg2: memref<1x1x4x516xf32, #tpu.memory_space<vmem>>, %arg3: memref<8x12xf32, #tpu.memory_space<vmem>>, %arg4: memref<8x1xf32, #tpu.memory_space<vmem>>, %arg5: memref<1x8x512xf32, #tpu.memory_space<vmem>>, %arg6: memref<1x1x8x2xf32, #tpu.memory_space<vmem>>) attributes {dimension_semantics = [#tpu.dimension_semantics<parallel>, #tpu.dimension_semantics<parallel>], iteration_bounds = array<i64: 2, 1>, scalar_prefetch = 0 : i64, scratch_operands = 0 : i64, tpu.core_type = #tpu.core_type<tc>, window_params = [{transform_indices = @transform_0, window_bounds = array<i64: 1, 1, 4, 516>}, {pipeline_mode = #tpu.pipeline_mode<synchronous>, transform_indices = @transform_1, window_bounds = array<i64: 8, 12>}, {pipeline_mode = #tpu.pipeline_mode<synchronous>, transform_indices = @transform_2, window_bounds = array<i64: 8, 1>}, {transform_indices = @transform_3, window_bounds = array<i64: 1, 8, 512>}, {transform_indices = @transform_4, window_bounds = array<i64: 1, 1, 8, 2>}]} {
    %c0 = arith.constant 0 : index
    %c0_0 = arith.constant 0 : index
    %c0_1 = arith.constant 0 : index
    %c0_2 = arith.constant 0 : index
    %0 = vector.load %arg2[%c0, %c0_0, %c0_1, %c0_2] : memref<1x1x4x516xf32, #tpu.memory_space<vmem>>, vector<1x1x4x516xf32>
    %1 = vector.shape_cast %0 : vector<1x1x4x516xf32> to vector<4x516xf32>
    %2 = vector.extract_strided_slice %1 {offsets = [0, 0], sizes = [4, 512], strides = [1, 1]} : vector<4x516xf32> to vector<4x512xf32>
    %3 = vector.extract_strided_slice %1 {offsets = [0, 2], sizes = [4, 512], strides = [1, 1]} : vector<4x516xf32> to vector<4x512xf32>
    %4 = vector.extract_strided_slice %1 {offsets = [0, 4], sizes = [4, 512], strides = [1, 1]} : vector<4x516xf32> to vector<4x512xf32>
    %5 = tpu.concatenate %2, %3, %4 in 0 : vector<4x512xf32>, vector<4x512xf32>, vector<4x512xf32> -> vector<12x512xf32>
    %c0_3 = arith.constant 0 : index
    %c0_4 = arith.constant 0 : index
    %6 = vector.load %arg3[%c0_3, %c0_4] : memref<8x12xf32, #tpu.memory_space<vmem>>, vector<8x12xf32>
    %cst = arith.constant dense<0.000000e+00> : vector<8x512xf32>
    %7 = tpu.matmul %6, %5, %cst {dimension_numbers = #tpu.dot_dimension_numbers<[1], [0], [0], [1], [0, 0, 1, 1], [], []>} : vector<8x12xf32>, vector<12x512xf32>, vector<8x512xf32> -> vector<8x512xf32>
    %c0_5 = arith.constant 0 : index
    %c0_6 = arith.constant 0 : index
    %8 = vector.load %arg4[%c0_5, %c0_6] : memref<8x1xf32, #tpu.memory_space<vmem>>, vector<8x1xf32>
    %9 = vector.broadcast %8 : vector<8x1xf32> to vector<8x512xf32>
    %10 = arith.addf %7, %9 : vector<8x512xf32>
    %cst_7 = arith.constant 0.000000e+00 : f32
    %11 = vector.broadcast %cst_7 : f32 to vector<8x512xf32>
    %12 = arith.maximumf %10, %11 : vector<8x512xf32>
    %c0_8 = arith.constant 0 : index
    %c0_9 = arith.constant 0 : index
    %c0_10 = arith.constant 0 : index
    %13 = vector.load %arg5[%c0_8, %c0_9, %c0_10] : memref<1x8x512xf32, #tpu.memory_space<vmem>>, vector<1x8x512xf32>
    %14 = vector.shape_cast %13 : vector<1x8x512xf32> to vector<8x512xf32>
    %15 = vector.shape_cast %12 : vector<8x512xf32> to vector<1x8x512xf32>
    tpu.vector_store %arg5[%c0_8, %c0_9, %c0_10], %15 {strides = array<i32>} : memref<1x8x512xf32, #tpu.memory_space<vmem>>, vector<1x8x512xf32>,
    %16 = tpu.iota {dimensions = array<i32: 1>} : vector<1x512xi32>
    %c512_i32 = arith.constant 512 : i32
    %17 = arith.muli %arg1, %c512_i32 : i32
    %18 = vector.broadcast %17 : i32 to vector<1x512xi32>
    %19 = arith.addi %18, %16 : vector<1x512xi32>
    %c16_i32 = arith.constant 16 : i32
    %20 = vector.broadcast %c16_i32 : i32 to vector<1x512xi32>
    %21 = arith.cmpi slt, %19, %20 : vector<1x512xi32>
    %cst_11 = arith.constant 0.000000e+00 : f32
    %22 = vector.shape_cast %21 : vector<1x512xi1> to vector<1x512xi1>
    %23 = vector.broadcast %22 : vector<1x512xi1> to vector<8x512xi1>
    %24 = vector.broadcast %cst_11 : f32 to vector<8x512xf32>
    %25 = arith.select %23, %12, %24 : vector<8x512xi1>, vector<8x512xf32>
    %cst_12 = arith.constant dense<0.000000e+00> : vector<8xf32>
    %26 = vector.multi_reduction <add>, %25, %cst_12 [1] : vector<8x512xf32> to vector<8xf32>
    %27 = vector.shape_cast %26 : vector<8xf32> to vector<8x1xf32>
    %28 = arith.mulf %25, %25 : vector<8x512xf32>
    %cst_13 = arith.constant dense<0.000000e+00> : vector<8xf32>
    %29 = vector.multi_reduction <add>, %28, %cst_13 [1] : vector<8x512xf32> to vector<8xf32>
    %30 = vector.shape_cast %29 : vector<8xf32> to vector<8x1xf32>
    %31 = tpu.concatenate %27, %30 in 1 : vector<8x1xf32>, vector<8x1xf32> -> vector<8x2xf32>
    %c0_14 = arith.constant 0 : index
    %c0_15 = arith.constant 0 : index
    %c0_16 = arith.constant 0 : index
    %c0_17 = arith.constant 0 : index
    %32 = vector.load %arg6[%c0_14, %c0_15, %c0_16, %c0_17] : memref<1x1x8x2xf32, #tpu.memory_space<vmem>>, vector<1x1x8x2xf32>
    %33 = vector.shape_cast %32 : vector<1x1x8x2xf32> to vector<8x2xf32>
    %34 = vector.shape_cast %31 : vector<8x2xf32> to vector<1x1x8x2xf32>
    tpu.vector_store %arg6[%c0_14, %c0_15, %c0_16, %c0_17], %34 {strides = array<i32>} : memref<1x1x8x2xf32, #tpu.memory_space<vmem>>, vector<1x1x8x2xf32>,
    return
  }
  func.func @transform_0(%arg0: i32, %arg1: i32) -> (i32, i32, i32, i32) {
    %c0_i32 = arith.constant 0 : i32
    %c0_i32_0 = arith.constant 0 : i32
    %c0_i32_1 = arith.constant 0 : i32
    return %arg0, %arg1, %c0_i32, %c0_i32_0 : i32, i32, i32, i32
  }
  func.func @transform_1(%arg0: i32, %arg1: i32) -> (i32, i32) {
    %c0_i32 = arith.constant 0 : i32
    %c0_i32_0 = arith.constant 0 : i32
    %c0_i32_1 = arith.constant 0 : i32
    return %c0_i32, %c0_i32_0 : i32, i32
  }
  func.func @transform_2(%arg0: i32, %arg1: i32) -> (i32, i32) {
    %c0_i32 = arith.constant 0 : i32
    %c0_i32_0 = arith.constant 0 : i32
    %c0_i32_1 = arith.constant 0 : i32
    return %c0_i32, %c0_i32_0 : i32, i32
  }
  func.func @transform_3(%arg0: i32, %arg1: i32) -> (i32, i32, i32) {
    %c0_i32 = arith.constant 0 : i32
    %c0_i32_0 = arith.constant 0 : i32
    return %arg0, %c0_i32, %arg1 : i32, i32, i32
  }
  func.func @transform_4(%arg0: i32, %arg1: i32) -> (i32, i32, i32, i32) {
    %c0_i32 = arith.constant 0 : i32
    %c0_i32_0 = arith.constant 0 : i32
    %c0_i32_1 = arith.constant 0 : i32
    return %arg0, %arg1, %c0_i32, %c0_i32_0 : i32, i32, i32, i32
  }
}

module attributes {stable_mosaic.version = 11 : i64} {
  func.func @_bn_apply_kernel(%arg0: i32, %arg1: i32, %arg2: memref<1x8x512xf32, #tpu.memory_space<vmem>>, %arg3: memref<8x1xf32, #tpu.memory_space<vmem>>, %arg4: memref<8x1xf32, #tpu.memory_space<vmem>>, %arg5: memref<1x8x512xf32, #tpu.memory_space<vmem>>) attributes {dimension_semantics = [#tpu.dimension_semantics<parallel>, #tpu.dimension_semantics<parallel>], iteration_bounds = array<i64: 2, 1>, scalar_prefetch = 0 : i64, scratch_operands = 0 : i64, tpu.core_type = #tpu.core_type<tc>, window_params = [{transform_indices = @transform_0, window_bounds = array<i64: 1, 8, 512>}, {pipeline_mode = #tpu.pipeline_mode<synchronous>, transform_indices = @transform_1, window_bounds = array<i64: 8, 1>}, {pipeline_mode = #tpu.pipeline_mode<synchronous>, transform_indices = @transform_2, window_bounds = array<i64: 8, 1>}, {transform_indices = @transform_3, window_bounds = array<i64: 1, 8, 512>}]} {
    %c0 = arith.constant 0 : index
    %c0_0 = arith.constant 0 : index
    %c0_1 = arith.constant 0 : index
    %0 = vector.load %arg2[%c0, %c0_0, %c0_1] : memref<1x8x512xf32, #tpu.memory_space<vmem>>, vector<1x8x512xf32>
    %1 = vector.shape_cast %0 : vector<1x8x512xf32> to vector<8x512xf32>
    %c0_2 = arith.constant 0 : index
    %c0_3 = arith.constant 0 : index
    %2 = vector.load %arg3[%c0_2, %c0_3] : memref<8x1xf32, #tpu.memory_space<vmem>>, vector<8x1xf32>
    %3 = vector.broadcast %2 : vector<8x1xf32> to vector<8x512xf32>
    %4 = arith.mulf %1, %3 : vector<8x512xf32>
    %c0_4 = arith.constant 0 : index
    %c0_5 = arith.constant 0 : index
    %5 = vector.load %arg4[%c0_4, %c0_5] : memref<8x1xf32, #tpu.memory_space<vmem>>, vector<8x1xf32>
    %6 = vector.broadcast %5 : vector<8x1xf32> to vector<8x512xf32>
    %7 = arith.addf %4, %6 : vector<8x512xf32>
    %c0_6 = arith.constant 0 : index
    %c0_7 = arith.constant 0 : index
    %c0_8 = arith.constant 0 : index
    %8 = vector.load %arg5[%c0_6, %c0_7, %c0_8] : memref<1x8x512xf32, #tpu.memory_space<vmem>>, vector<1x8x512xf32>
    %9 = vector.shape_cast %8 : vector<1x8x512xf32> to vector<8x512xf32>
    %10 = vector.shape_cast %7 : vector<8x512xf32> to vector<1x8x512xf32>
    tpu.vector_store %arg5[%c0_6, %c0_7, %c0_8], %10 {strides = array<i32>} : memref<1x8x512xf32, #tpu.memory_space<vmem>>, vector<1x8x512xf32>,
    return
  }
  func.func @transform_0(%arg0: i32, %arg1: i32) -> (i32, i32, i32) {
    %c0_i32 = arith.constant 0 : i32
    %c0_i32_0 = arith.constant 0 : i32
    return %arg0, %c0_i32, %arg1 : i32, i32, i32
  }
  func.func @transform_1(%arg0: i32, %arg1: i32) -> (i32, i32) {
    %c0_i32 = arith.constant 0 : i32
    %c0_i32_0 = arith.constant 0 : i32
    %c0_i32_1 = arith.constant 0 : i32
    return %c0_i32, %c0_i32_0 : i32, i32
  }
  func.func @transform_2(%arg0: i32, %arg1: i32) -> (i32, i32) {
    %c0_i32 = arith.constant 0 : i32
    %c0_i32_0 = arith.constant 0 : i32
    %c0_i32_1 = arith.constant 0 : i32
    return %c0_i32, %c0_i32_0 : i32, i32
  }
  func.func @transform_3(%arg0: i32, %arg1: i32) -> (i32, i32, i32) {
    %c0_i32 = arith.constant 0 : i32
    %c0_i32_0 = arith.constant 0 : i32
    return %arg0, %c0_i32, %arg1 : i32, i32, i32
  }
}

</mosaic_0001>

<bundles_post_ra>
// kernel: tdnn_block_forward.3
= control target key start
LH: loop header
LB: loop body
LE: loop exit
PB: predicated region body
PF: predicated region fallthrough
CT: control target
= control target key end

     0   :  { %s409_s12 = smov 0   ;;  %s411_s13 = smov 0   ;;  %s448_s0 = inlined_call_operand.vmem [shape: f32[2,8,512], index: 0, kind: input, shape index: {}, may-alias: {0,3}]   ;;  %s449_s1 = inlined_call_operand.vmem [shape: f32[8,1], index: 1, kind: input, shape index: {}]   ;;  %s450_s2 = inlined_call_operand.vmem [shape: f32[8,1], index: 2, kind: input, shape index: {}]   ;;  %s451_s3 = inlined_call_operand.vmem [shape: f32[2,8,512], index: 3, kind: output, shape index: {}, may-alias: {0,3}]  }
   0x1   :  { %s413_s14 = smov 0  }
   0x2 LB: > { %s25_s15 = sadd.s32 1, %s382_s13  ;;  %p329_p0 = scmp.ge.s32.totalorder %s386_s14, 1  ;;  %s386_s14 = sphi %s413_s14, %s13_s14   ;;  %s382_s13 = sphi %s411_s13, %s453_s13   ;;  %s378_s12 = sphi %s409_s12, %s452_s12  }
   0x3   : > { %p27_p1 = scmp.ge.s32.totalorder %s25_s15, 2  ;;  %p158_p2 = scmp.lt.s32.totalorder %s386_s14, 3 }
   0x5   : > { %s455_s15 = smov (%p27_p1, %s25_s15), 0  ;;  %p159_p3 = pnand %p329_p0, %p158_p2 }
   0x6   : > { %v214_v0 = vld [vmem:[%s449_s1] sm:$0xff] (!%p159_p3)  ;;  %v388_v1 = vmov (!%p159_p3), 0   ;;  %p191_p4 = scmp.lt.s32.totalorder (!%p159_p3), %s378_s12, 1 }
   0x7   : > { %162 = sbr.rel (%p159_p3) target bundleno = 144 (0x90), region = 32  ;;  %363 = vset.pattern.permute.xlu0 (!%p159_p3), %v388_v1  ;;  %v224_v2 = vld [vmem:[%s450_s2] sm:$0xff] (!%p159_p3) }
   0x8   : > { %217 = vperm.xlu0 (!%p159_p3), %363, %v214_v0  }
   0xc   : > { %227 = vperm.xlu0 (!%p159_p3), %363, %v224_v2  }
   0xe   : > { %s457_s12 = smov (!%p191_p4, %s378_s12), 1 }
   0xf   : > { %s336_s20 = sshll.u32 %s457_s12, 5 }
  0x10   : > { %s198_s23 = scalar_lea.vmem %s448_s0, %s336_s20  ;;  %s208_s26 = scalar_lea.vmem %s451_s3, %s336_s20 }
  0x11   : > { %v210_v3 = vld [vmem:[%s198_s23] sm:$0xff]  ;;  %v211_v5 = vld [vmem:[%s198_s23 + $0x8] sm:$0xff]  ;;  %v212_v6 = vld [vmem:[%s198_s23 + $0x10] sm:$0xff] }
  0x12   : > { %v213_v7 = vld [vmem:[%s198_s23 + $0x18] sm:$0xff] }
  0x87   : > { %v218_v4 = vpop.permute.xlu0 %217 }
  0x88   : > { %v220_v8 = vmul.f32 %v218_v4, %v210_v3  ;;  %v221_v9 = vmul.f32 %v218_v4, %v211_v5  ;;  %v222_v10 = vmul.f32 %v218_v4, %v212_v6  ;;  %v223_v11 = vmul.f32 %v218_v4, %v213_v7 }
  0x8b   : > { %v228_v12 = vpop.permute.xlu0 %227 }
  0x8c   : > { %v230_v13 = vadd.f32 %v228_v12, %v220_v8  ;;  %v231_v14 = vadd.f32 %v228_v12, %v221_v9  ;;  %v232_v15 = vadd.f32 %v228_v12, %v222_v10  ;;  %v233_v16 = vadd.f32 %v228_v12, %v223_v11 }
  0x8e   : > { %234 = vst [vmem:[%s208_s26] sm:$0xff] %v230_v13  ;;  %235 = vst [vmem:[%s208_s26 + $0x8] sm:$0xff] %v231_v14 }
  0x8f   : > { %236 = vst [vmem:[%s208_s26 + $0x10] sm:$0xff] %v232_v15  ;;  %237 = vst [vmem:[%s208_s26 + $0x18] sm:$0xff] %v233_v16 }
  0x90 PF: > { %s13_s14 = sadd.s32 1, %s386_s14   ;;  %s452_s12 = smov %s382_s13 }
  0x91   : > { %p10_p5 = scmp.ge.s32.totalorder %s13_s14, 4   ;;  %s453_s13 = smov %s455_s15 }
  0x93   :  { %12 = sbr.rel (!%p10_p5) target bundleno = 2 (0x2), region = 62 }

// kernel: tdnn_block_forward.2
= control target key start
LH: loop header
LB: loop body
LE: loop exit
PB: predicated region body
PF: predicated region fallthrough
CT: control target
= control target key end

     0   :  { %s791_s15 = smov 0   ;;  %s793_s16 = smov 0   ;;  %s874_s0 = inlined_call_operand.vmem [shape: f32[2,1,4,516], index: 0, kind: input, shape index: {}]   ;;  %s875_s1 = inlined_call_operand.vmem [shape: f32[8,12], index: 1, kind: input, shape index: {}]   ;;  %s876_s2 = inlined_call_operand.vmem [shape: f32[8,1], index: 2, kind: input, shape index: {}]   ;;  %s877_s3 = inlined_call_operand.vmem [shape: f32[2,8,512], index: 3, kind: output, shape index: {0}]   ;;  %s878_s4 = inlined_call_operand.vmem [shape: f32[2,1,8,2], index: 4, kind: output, shape index: {1}]  }
   0x1   :  { %s795_s17 = smov 0  }
   0x2 LB: > { %s27_s18 = sadd.s32 1, %s755_s16  ;;  %p655_p0 = scmp.ge.s32.totalorder %s759_s17, 1  ;;  %s759_s17 = sphi %s795_s17, %s15_s17   ;;  %s755_s16 = sphi %s793_s16, %s882_s16   ;;  %s751_s15 = sphi %s791_s15, %s881_s15  }
   0x3   : > { %p29_p1 = scmp.ge.s32.totalorder %s27_s18, 2  ;;  %p187_p2 = scmp.lt.s32.totalorder %s759_s17, 3 }
   0x5   : > { %s884_s18 = smov (%p29_p1, %s27_s18), 0  ;;  %p188_p3 = pnand %p655_p0, %p187_p2 }
   0x6   : > { %p228_p4 = scmp.lt.s32.totalorder (!%p188_p3), %s751_s15, 1  ;;  %v761_v7 = vmov (!%p188_p3), 0.0   ;;  %s762_s23 = smov (!%p188_p3), 126   ;;  %v764_v13 = vmov (!%p188_p3), 0   ;;  %v307_v14 = vld [vmem:[%s876_s2] sm:$0xff] (!%p188_p3)  ;;  %vm277_vm0 = vcmask (!%p188_p3), 1031168   ;;  %v475_v47 = vlaneseq (!%p188_p3) }
   0x7   : > { %191 = sbr.rel (%p188_p3) target bundleno = 512 (0x200), region = 32  ;;  %389 = vmatprep.mubr.f32.mxu0 (!%p188_p3), %v761_v7  ;;  %460 = vmatprep.mubr.f32.mxu1 (!%p188_p3), %v761_v7  ;;  %s763_s24 = smov (!%p188_p3), 124   ;;  %vm296_vm1 = vcmask (!%p188_p3), 1014784   ;;  %vm301_vm2 = vcmask (!%p188_p3), 1043456   ;;  %vm765_vm3 = vmmov (!%p188_p3), 1   ;;  %vm313_vm5 = vcmask (!%p188_p3), 97280  }
   0x8   : > { %731 = vset.pattern.permute.xlu0 (!%p188_p3), %v764_v13  ;;  %vm830_vm4 = vmpackc.low (!%p188_p3), %vm301_vm2, %vm765_vm3  ;;  %v306_v38 = vld [vmem:[%s875_s1] sm:$0xff] (!%p188_p3)  ;;  %v476_v49 = vand.u32 (!%p188_p3), 127, %v475_v47  ;;  %vm516_vm7 = vcmask (!%p188_p3), 7168   ;;  %vm518_vm8 = vcmask (!%p188_p3), 15360  }
   0xa   : > { %vm486_vm6 = vcmp.lt.s32.totalorder (!%p188_p3), %v476_v49, 16 }
   0xe   : > { %s886_s15 = smov (!%p228_p4, %s751_s15), 1 }
   0xf   : > { %s681_s19 = smul.u32 20, %s886_s15  ;;  %s668_s29 = sshll.u32 %s886_s15, 5 }
  0x10   : > { %s245_s6 = scalar_lea.vmem %s877_s3, %s668_s29  ;;  %s659_s7 = sshll.u32 %s886_s15, 3 }
  0x11   : > { %s236_s22 = scalar_lea.vmem %s874_s0, %s681_s19  ;;  %s253_s10 = scalar_lea.vmem %s878_s4, %s659_s7 }
  0x12   : > { %v254_v0 = vld [vmem:[%s236_s22] sm:$0xff]  ;;  %v815_v1 = vld [vmem:[%s236_s22 + $0x8] sm:$0xff]  ;;  %v256_v4 = vld [vmem:[%s236_s22 + $0x10] sm:$0xf] }
  0x13   : > { %v265_v2 = vcombine.low %v815_v1, %v815_v1  ;;  %v259_v3 = vcombine.high %v254_v0, %v254_v0  ;;  %v264_v8 = vcombine.low %v254_v0, %v254_v0  ;;  %v266_v9 = vcombine.low %v256_v4, %v256_v4 }
  0x14   : > { %v260_v10 = vcombine.high %v815_v1, %v815_v1 }
  0x15   : > { %v711_v5 = vpack.i.bf16 %v265_v2, %v254_v0  ;;  %v716_v6 = vpack.i.bf16 %v815_v1, %v259_v3  ;;  %v721_v11 = vpack.i.bf16 %v266_v9, %v815_v1 }
  0x16   : > { %v726_v12 = vpack.i.bf16 %v256_v4, %v260_v10 }
  0x17   : > { %712 = vrot.lane.b32.xlu0 %v711_v5, %s762_s23  ;;  %717 = vrot.lane.b32.xlu1 %v716_v6, %s763_s24 }
  0x1b   : > { %267 = vrot.lane.b32.xlu0 %v264_v8, %s762_s23  ;;  %286 = vrot.lane.b32.xlu1 %v254_v0, %s763_s24 }
  0x1f   : > { %722 = vrot.lane.b32.xlu0 %v721_v11, %s762_s23  ;;  %727 = vrot.lane.b32.xlu1 %v726_v12, %s763_s24 }
  0x23   : > { %310 = vperm.xlu0 %731, %v307_v14  }
  0x89   : > { %v713_v15 = vpop.permute.xlu0 %712  ;;  %v718_v16 = vpop.permute.xlu1 %717 }
  0x8a   : > { %v715_v17 = vunpack.i.h.bf16 %v713_v15  ;;  %v714_v18 = vunpack.i.l.bf16 %v713_v15  ;;  %v720_v19 = vunpack.i.h.bf16 %v718_v16  ;;  %v719_v20 = vunpack.i.l.bf16 %v718_v16 }
  0x8c   : > { %v279_v21 = vsel %vm277_vm0, %v714_v18, %v715_v17  ;;  %v298_v22 = vsel %vm296_vm1, %v719_v20, %v720_v19 }
  0x8d   : > { %v268_v23 = vpop.permute.xlu0 %267  ;;  %v287_v24 = vpop.permute.xlu1 %286  ;;  %v303_v25 = vsel %vm301_vm2, %v259_v3, %v279_v21 }
  0x8e   : > { %v278_v27 = vsel %vm277_vm0, %v268_v23, %v714_v18  ;;  %v297_v28 = vsel %vm296_vm1, %v287_v24, %v719_v20  ;;  %v669_v29 = vpack.c.bf16 %v298_v22, %v303_v25 }
  0x8f   : > { %v302_v30 = vsel %vm301_vm2, %v254_v0, %v278_v27 }
  0x90   : > { %v672_v31 = vpack.c.bf16 %v297_v28, %v302_v30  ;;  %671 = vmatprep.subr.msk.bf16.mxu0 %vm830_vm4, %v669_v29 }
  0x91   : > { %v723_v32 = vpop.permute.xlu0 %722  ;;  %v728_v33 = vpop.permute.xlu1 %727 }
  0x92   : > { %v725_v34 = vunpack.i.h.bf16 %v723_v32  ;;  %v724_v35 = vunpack.i.l.bf16 %v723_v32  ;;  %v730_v36 = vunpack.i.h.bf16 %v728_v33  ;;  %v729_v37 = vunpack.i.l.bf16 %v728_v33  ;;  %674 = vmatpush1.bf16.msk.msra.mxu0 %vm830_vm4, %v672_v31 }
  0x94   : > { %v280_v39 = vsel %vm277_vm0, %v715_v17, %v724_v35  ;;  %v281_v40 = vsel %vm277_vm0, %v724_v35, %v725_v34  ;;  %v300_v41 = vsel %vm296_vm1, %v729_v37, %v730_v36  ;;  %v299_v42 = vsel %vm296_vm1, %v720_v19, %v729_v37 }
  0x95   : > { %662 = vmatmul.mubr.msk.f32.vlgmr.msra.gmra.mrb[0].mxu0 %vm313_vm5, %v306_v38  ;;  %v305_v43 = vsel %vm301_vm2, %v260_v10, %v281_v40  ;;  %v304_v44 = vsel %vm301_vm2, %v815_v1, %v280_v39 }
  0x96   : > { %v675_v45 = vpack.c.bf16 %v300_v41, %v305_v43  ;;  %v678_v46 = vpack.c.bf16 %v299_v42, %v304_v44 }
  0x98   : > { %677 = vmatprep.subr.msk.bf16.mxu1 %vm830_vm4, %v675_v45 }
  0x99   : > { %680 = vmatpush1.bf16.msk.msra.mxu1 %vm830_vm4, %v678_v46 }
  0x9c   : > { %665 = vmatmul.mubr.msk.f32.vlgmr.msra.gmra.mrb[0].mxu1 %vm313_vm5, %v306_v38 }
  0xa2   : > { %v311_v48 = vpop.permute.xlu0 %310 }
 0x168   : > { %v391_v50 = vpop.f32.mrb[0].mxu0 }
 0x169   : > { %v392_v51 = vadd.f32 %v391_v50, %v311_v48  ;;  %v393_v52 = vpop.f32.mrb[1].mxu0 }
 0x16a   : > { %v394_v53 = vadd.f32 %v393_v52, %v311_v48 }
 0x16b   : > { %v467_v54 = vmax.f32 %v392_v51, 0.0 }
 0x16c   : > { %v468_v55 = vmax.f32 %v394_v53, 0.0 }
 0x16d   : > { %471 = vst [vmem:[%s245_s6] sm:$0xff] %v467_v54  ;;  %v498_v56 = vsel %vm486_vm6, %v467_v54, 0.0 }
 0x16e   : > { %472 = vst [vmem:[%s245_s6 + $0x8] sm:$0xff] %v468_v55  ;;  %505 = vadd.xlane.f32.xlu1 %v498_v56  ;;  %v507_v57 = vmul.f32 %v498_v56, %v498_v56 }
 0x16f   : > { %v462_v58 = vpop.f32.mrb[0].mxu1 }
 0x170   : > { %v463_v59 = vadd.f32 %v462_v58, %v311_v48  ;;  %v464_v60 = vpop.f32.mrb[1].mxu1  ;;  %514 = vadd.xlane.f32.xlu0 %v507_v57 }
 0x171   : > { %v465_v61 = vadd.f32 %v464_v60, %v311_v48 }
 0x172   : > { %v469_v62 = vmax.f32 %v463_v59, 0.0 }
 0x173   : > { %v470_v63 = vmax.f32 %v465_v61, 0.0 }
 0x174   : > { %473 = vst [vmem:[%s245_s6 + $0x10] sm:$0xff] %v469_v62 }
 0x175   : > { %474 = vst [vmem:[%s245_s6 + $0x18] sm:$0xff] %v470_v63 }
 0x1fb   : > { %v506_v0 = vpop.xlane.xlu1 %505 }
 0x1fd   : > { %v515_v1 = vpop.xlane.xlu0 %514 }
 0x1fe   : > { %v517_v2 = vsel %vm516_vm7, %v506_v0, %v515_v1 }
 0x1ff   : > { %519 = vst.msk [vmem:[%s253_s10] sm:$0xff] %vm518_vm8, %v517_v2 }
 0x200 PF: > { %s15_s17 = sadd.s32 1, %s759_s17   ;;  %s881_s15 = smov %s755_s16 }
 0x201   : > { %p12_p5 = scmp.ge.s32.totalorder %s15_s17, 4   ;;  %s882_s16 = smov %s884_s18 }
 0x203   :  { %14 = sbr.rel (!%p12_p5) target bundleno = 2 (0x2), region = 74 }

</bundles_post_ra>
